<compile_context>
chip_gen: v7x
topology: tpu7x:2x2x1
jax: 0.10.0
libtpu: 0.0.40
codegen_flags: <defaults>
</compile_context>

<pallas_src>
import jax
import jax.numpy as jnp
import numpy as np
from jax.experimental import pallas as pl
from jax.experimental.pallas import tpu as pltpu

NUM_CLASSES = 4
NUM_ANCHORS = (4, 6, 6, 6, 4, 4)
IN_CHANNELS = (32, 32, 16, 16, 16, 16)   # scaled-down stand-in for (800, 512, 512, 256, 256, 256)
FM_SIZES    = (10, 8, 6, 5, 3, 2)        # scaled-down stand-in for (38, 19, 10, 5, 3, 2)
BATCH = 2
L2_EPS = 1e-10
BN_EPS = 1e-5
LANE = 128


def _round_up(v, m):
    return (v + m - 1) // m * m


# ---- static geometry shared by every scale (common padded spatial grid) ----
NUM_SCALES = len(FM_SIZES)
C_MAX = max(IN_CHANNELS)                     # 32
HC = max(FM_SIZES) + 2                       # 12: common padded grid height
WC = HC                                      # 12: common padded grid width (square maps)
MP = HC * WC                                 # 144: flattened common padded spatial size
SP = _round_up(MP, LANE)                     # 256: lane-dense output width
B_SLACK = WC + 1                             # 13: slack so every tap slice stays in-bounds
LP = _round_up(2 * B_SLACK + SP, LANE)       # 384: lane-aligned input slab width
K_TAPS = 9 * C_MAX                           # 288: stacked-tap contraction depth
K_PAD = _round_up(K_TAPS + 1, LANE)          # 384: +1 ones-row (bias), rounded to 128
O_PAD = LANE                                 # 128: fused [loc | cls | zero-pad] output channels
SP_CHUNK = min(SP, 512)                      # bound live matmul-result vregs per chunk

assert max(a * 4 + a * NUM_CLASSES for a in NUM_ANCHORS) <= O_PAD
assert SP % SP_CHUNK == 0 and B_SLACK + WC + 1 + SP <= LP


# ---------------- Pallas kernel ----------------

def _dsod_heads_kernel(x_ref, w_ref, o_ref, xs_ref):
    # x_ref : (1, 1, C_MAX, LP)  bf16  zero-padded, spatially-flattened raw feature map
    # w_ref : (1, O_PAD, K_PAD)  bf16  fused weights (L2 gamma + BN scale folded; col K_TAPS = bias)
    # o_ref : (1, 1, O_PAD, SP)  f32   conv+BN output over the common padded spatial grid
    # xs_ref: (K_PAD, SP)        bf16  scratch: stacked-tap operand (+ ones row for the bias)
    x = x_ref[0, 0].astype(jnp.float32)                                   # (C_MAX, LP)
    norm = jnp.sqrt(jnp.sum(x * x, axis=0, keepdims=True)) + L2_EPS       # matches PyTorch L2Norm
    xn = (x * pl.reciprocal(norm, approx=True)).astype(jnp.bfloat16)      # gamma folded into w

    # Build the stacked im2col operand once: 9 statically shifted windows (shift done exactly
    # once here), plus a ones row so the folded BatchNorm bias comes out of the MXU for free.
    for k in range(9):                                                    # 3x3 taps, unrolled
        dy, dx = k // 3 - 1, k % 3 - 1
        s = B_SLACK + dy * WC + dx                                        # static lane offset
        xs_ref[k * C_MAX:(k + 1) * C_MAX, :] = xn[:, s:s + SP]
    tail_rows = jax.lax.broadcasted_iota(jnp.int32, (K_PAD - K_TAPS, SP), 0)
    xs_ref[K_TAPS:, :] = jnp.where(tail_rows == 0, jnp.float32(1.0),
                                   jnp.float32(0.0)).astype(jnp.bfloat16)

    # One deep (K = 9*C + 1 -> 384) MXU matmul per output chunk; f32 accumulate, no VALU adds.
    w = w_ref[0]
    for c0 in range(0, SP, SP_CHUNK):
        o_ref[0, 0, :, c0:c0 + SP_CHUNK] = jnp.dot(
            w, xs_ref[:, c0:c0 + SP_CHUNK], preferred_element_type=jnp.float32)


def dsod_heads_pallas(x_slab, w_all):
    # x_slab: (S, N, C_MAX, LP) bf16 ; w_all: (S, O_PAD, K_PAD) bf16
    S, N = x_slab.shape[0], x_slab.shape[1]
    return pl.pallas_call(
        _dsod_heads_kernel,
        out_shape=jax.ShapeDtypeStruct((S, N, O_PAD, SP), jnp.float32),
        grid_spec=pltpu.PrefetchScalarGridSpec(
            num_scalar_prefetch=0,
            grid=(S, N),
            in_specs=[pl.BlockSpec((1, 1, C_MAX, LP), lambda s, n: (s, n, 0, 0)),
                      pl.BlockSpec((1, O_PAD, K_PAD), lambda s, n: (s, 0, 0))],
            out_specs=pl.BlockSpec((1, 1, O_PAD, SP), lambda s, n: (s, n, 0, 0)),
            scratch_shapes=[pltpu.VMEM((K_PAD, SP), jnp.bfloat16)]),
        compiler_params=pltpu.CompilerParams(
            dimension_semantics=("parallel", "parallel"),
            vmem_limit_bytes=32 * 1024 * 1024),
    )(x_slab, w_all)


# ---------------- parameter handling ----------------

def init_params(key):
    # Deterministic synthetic parameters:
    #  - L2Norm gamma = 20 (as in the module)
    #  - conv weights ~ N(0, 0.01) in HWIO layout, no bias
    #  - BatchNorm2d (inference mode) folded into per-channel scale/bias
    params = {"l2_gamma": [], "w_loc": [], "w_cls": [],
              "s_loc": [], "b_loc": [], "s_cls": [], "b_cls": []}
    for i, (C, A) in enumerate(zip(IN_CHANNELS, NUM_ANCHORS)):
        OL, OC = A * 4, A * NUM_CLASSES
        keys = jax.random.split(jax.random.fold_in(key, i), 10)
        params["l2_gamma"].append(jnp.full((C,), 20.0, jnp.float32))
        params["w_loc"].append(0.01 * jax.random.normal(keys[0], (3, 3, C, OL), jnp.float32))
        params["w_cls"].append(0.01 * jax.random.normal(keys[1], (3, 3, C, OC), jnp.float32))
        for (ns, nb, O, ks, kb, km, kv) in (
                ("s_loc", "b_loc", OL, keys[2], keys[3], keys[4], keys[5]),
                ("s_cls", "b_cls", OC, keys[6], keys[7], keys[8], keys[9])):
            g = 1.0 + 0.1 * jax.random.normal(ks, (O,), jnp.float32)
            b = 0.1 * jax.random.normal(kb, (O,), jnp.float32)
            m = 0.1 * jax.random.normal(km, (O,), jnp.float32)
            v = 1.0 + 0.1 * jax.random.uniform(kv, (O,), jnp.float32)
            scale = g / jnp.sqrt(v + BN_EPS)
            params[ns].append(scale)
            params[nb].append(b - m * scale)
    return params


def fold_params(params):
    # Fold L2Norm gamma (input channels) and BN scale (output channels) into the conv weights,
    # fuse loc+cls along output channels (zero-padded to 128), lay out the contraction dim as
    # [tap0 x C_MAX | ... | tap8 x C_MAX | bias | zero-pad to 384], cast to bf16.
    ws = []
    for i, (C, A) in enumerate(zip(IN_CHANNELS, NUM_ANCHORS)):
        OL, OC = A * 4, A * NUM_CLASSES
        O = OL + OC
        wl = params["w_loc"][i] * params["s_loc"][i].reshape(1, 1, 1, OL)
        wc = params["w_cls"][i] * params["s_cls"][i].reshape(1, 1, 1, OC)
        w = jnp.concatenate([wl, wc], axis=-1)                        # (3,3,C,O) HWIO
        w = w * params["l2_gamma"][i].reshape(1, 1, C, 1)             # fold L2Norm gamma
        w = jnp.transpose(w, (3, 0, 1, 2)).reshape(O, 9, C)           # (O, tap, Cin)
        w = jnp.pad(w, ((0, O_PAD - O), (0, 0), (0, C_MAX - C)))
        w = w.reshape(O_PAD, K_TAPS)
        b = jnp.pad(jnp.concatenate([params["b_loc"][i], params["b_cls"][i]]),
                    (0, O_PAD - O)).reshape(O_PAD, 1)
        w = jnp.concatenate([w, b], axis=1)                           # bias as the K_TAPS column
        w = jnp.pad(w, ((0, 0), (0, K_PAD - K_TAPS - 1)))
        ws.append(w)
    return jnp.stack(ws, axis=0).astype(jnp.bfloat16)                 # (S, O_PAD, K_PAD)


# ---------------- forward pass ----------------

@jax.jit
def dsod_forward(xs, w_all):
    N = xs[0].shape[0]
    # Pack all scales into one (S, N, C_MAX, LP) bf16 slab on a common zero-padded spatial grid.
    slabs = []
    for x in xs:
        _, C, H, W = x.shape
        xp = jnp.pad(x, ((0, 0), (0, 0), (1, HC - 1 - H), (1, WC - 1 - W)))   # (N,C,HC,WC)
        xp = xp.reshape(N, C, MP)
        xp = jnp.pad(xp, ((0, 0), (0, C_MAX - C), (B_SLACK, LP - B_SLACK - MP)))
        slabs.append(xp)
    x_slab = jnp.stack(slabs, axis=0).astype(jnp.bfloat16)

    out = dsod_heads_pallas(x_slab, w_all)                            # (S, N, O_PAD, SP) f32
    out = out[..., :MP].reshape(NUM_SCALES, N, O_PAD, HC, WC)
    out = jnp.transpose(out, (0, 1, 3, 4, 2))                         # ONE NCHW->NHWC for all scales

    loc_preds, cls_preds = [], []
    for i, (H, A) in enumerate(zip(FM_SIZES, NUM_ANCHORS)):
        OL, OC = A * 4, A * NUM_CLASSES
        o = out[i, :, 1:H + 1, 1:H + 1, :]                            # valid interior (N,H,W,128)
        loc_preds.append(o[..., :OL].reshape(N, H * H * A, 4))
        cls_preds.append(o[..., OL:OL + OC].reshape(N, H * H * A, NUM_CLASSES))
    return jnp.concatenate(loc_preds, axis=1), jnp.concatenate(cls_preds, axis=1)


def dsod_reference(xs, params):
    # Pure-JAX reference (L2Norm + lax.conv + folded BN) for validation.
    loc_preds, cls_preds = [], []
    for i, x in enumerate(xs):
        N, C, H, W = x.shape
        A = NUM_ANCHORS[i]
        norm = jnp.sqrt(jnp.sum(x * x, axis=1, keepdims=True)) + L2_EPS
        xn = (x / norm) * params["l2_gamma"][i].reshape(1, C, 1, 1)

        def conv_bn(wkey, skey, bkey):
            y = jax.lax.conv_general_dilated(
                xn, params[wkey][i], (1, 1), "SAME",
                dimension_numbers=("NCHW", "HWIO", "NCHW"),
                precision=jax.lax.Precision.HIGHEST)
            return (y * params[skey][i].reshape(1, -1, 1, 1)
                    + params[bkey][i].reshape(1, -1, 1, 1))

        loc = jnp.transpose(conv_bn("w_loc", "s_loc", "b_loc"), (0, 2, 3, 1))
        cls = jnp.transpose(conv_bn("w_cls", "s_cls", "b_cls"), (0, 2, 3, 1))
        loc_preds.append(loc.reshape(N, H * W * A, 4))
        cls_preds.append(cls.reshape(N, H * W * A, NUM_CLASSES))
    return jnp.concatenate(loc_preds, axis=1), jnp.concatenate(cls_preds, axis=1)


if __name__ == "__main__":
    key = jax.random.PRNGKey(0)
    params = init_params(jax.random.fold_in(key, 1))
    w_all = fold_params(params)

    # Six multi-scale NCHW feature maps (stand-ins for the DenseNet extractor outputs).
    xs = [jax.random.normal(jax.random.fold_in(key, 100 + i),
                            (BATCH, C, S, S), jnp.float32)
          for i, (C, S) in enumerate(zip(IN_CHANNELS, FM_SIZES))]

    loc, cls = dsod_forward(xs, w_all)
    jax.block_until_ready((loc, cls))

    loc_ref, cls_ref = dsod_reference(xs, params)
    np.testing.assert_allclose(np.asarray(loc), np.asarray(loc_ref), rtol=5e-2, atol=2e-2)
    np.testing.assert_allclose(np.asarray(cls), np.asarray(cls_ref), rtol=5e-2, atol=2e-2)
    n_anchors = sum(s * s * a for s, a in zip(FM_SIZES, NUM_ANCHORS))
    assert loc.shape == (BATCH, n_anchors, 4)
    assert cls.shape == (BATCH, n_anchors, NUM_CLASSES)

    print("KERNEL_OK")
</pallas_src>

<mosaic_0001>
module attributes {stable_mosaic.version = 11 : i64} {
  func.func @_dsod_heads_kernel(%arg0: i32, %arg1: i32, %arg2: memref<1x1x32x384xbf16, #tpu.memory_space<vmem>>, %arg3: memref<1x128x384xbf16, #tpu.memory_space<vmem>>, %arg4: memref<1x1x128x256xf32, #tpu.memory_space<vmem>>, %arg5: memref<384x256xbf16, #tpu.memory_space<vmem>>) attributes {dimension_semantics = [#tpu.dimension_semantics<parallel>, #tpu.dimension_semantics<parallel>], iteration_bounds = array<i64: 6, 2>, scalar_prefetch = 0 : i64, scratch_operands = 1 : i64, tpu.core_type = #tpu.core_type<tc>, window_params = [{transform_indices = @transform_0, window_bounds = array<i64: 1, 1, 32, 384>}, {transform_indices = @transform_1, window_bounds = array<i64: 1, 128, 384>}, {transform_indices = @transform_2, window_bounds = array<i64: 1, 1, 128, 256>}]} {
    %c0 = arith.constant 0 : index
    %c0_0 = arith.constant 0 : index
    %c0_1 = arith.constant 0 : index
    %c0_2 = arith.constant 0 : index
    %0 = vector.load %arg2[%c0, %c0_0, %c0_1, %c0_2] : memref<1x1x32x384xbf16, #tpu.memory_space<vmem>>, vector<1x1x32x384xbf16>
    %1 = vector.shape_cast %0 : vector<1x1x32x384xbf16> to vector<32x384xbf16>
    %2 = arith.extf %1 : vector<32x384xbf16> to vector<32x384xf32>
    %3 = arith.mulf %2, %2 : vector<32x384xf32>
    %cst = arith.constant dense<0.000000e+00> : vector<384xf32>
    %4 = vector.multi_reduction <add>, %3, %cst [0] : vector<32x384xf32> to vector<384xf32>
    %5 = vector.shape_cast %4 : vector<384xf32> to vector<1x384xf32>
    %6 = math.sqrt %5 : vector<1x384xf32>
    %cst_3 = arith.constant 1.000000e-10 : f32
    %7 = vector.broadcast %cst_3 : f32 to vector<1x384xf32>
    %8 = arith.addf %6, %7 : vector<1x384xf32>
    %9 = tpu.reciprocal %8 {approx = true} : vector<1x384xf32> -> vector<1x384xf32>
    %10 = vector.broadcast %9 : vector<1x384xf32> to vector<32x384xf32>
    %11 = arith.mulf %2, %10 : vector<32x384xf32>
    %12 = arith.truncf %11 : vector<32x384xf32> to vector<32x384xbf16>
    %13 = vector.extract_strided_slice %12 {offsets = [0, 0], sizes = [32, 256], strides = [1, 1]} : vector<32x384xbf16> to vector<32x256xbf16>
    %c0_4 = arith.constant 0 : index
    %c0_5 = arith.constant 0 : index
    %14 = vector.load %arg5[%c0_4, %c0_5] : memref<384x256xbf16, #tpu.memory_space<vmem>>, vector<32x256xbf16>
    tpu.vector_store %arg5[%c0_4, %c0_5], %13 {strides = array<i32>} : memref<384x256xbf16, #tpu.memory_space<vmem>>, vector<32x256xbf16>,
    %15 = vector.extract_strided_slice %12 {offsets = [0, 1], sizes = [32, 256], strides = [1, 1]} : vector<32x384xbf16> to vector<32x256xbf16>
    %c32 = arith.constant 32 : index
    %c0_6 = arith.constant 0 : index
    %16 = vector.load %arg5[%c32, %c0_6] : memref<384x256xbf16, #tpu.memory_space<vmem>>, vector<32x256xbf16>
    tpu.vector_store %arg5[%c32, %c0_6], %15 {strides = array<i32>} : memref<384x256xbf16, #tpu.memory_space<vmem>>, vector<32x256xbf16>,
    %17 = vector.extract_strided_slice %12 {offsets = [0, 2], sizes = [32, 256], strides = [1, 1]} : vector<32x384xbf16> to vector<32x256xbf16>
    %c64 = arith.constant 64 : index
    %c0_7 = arith.constant 0 : index
    %18 = vector.load %arg5[%c64, %c0_7] : memref<384x256xbf16, #tpu.memory_space<vmem>>, vector<32x256xbf16>
    tpu.vector_store %arg5[%c64, %c0_7], %17 {strides = array<i32>} : memref<384x256xbf16, #tpu.memory_space<vmem>>, vector<32x256xbf16>,
    %19 = vector.extract_strided_slice %12 {offsets = [0, 12], sizes = [32, 256], strides = [1, 1]} : vector<32x384xbf16> to vector<32x256xbf16>
    %c96 = arith.constant 96 : index
    %c0_8 = arith.constant 0 : index
    %20 = vector.load %arg5[%c96, %c0_8] : memref<384x256xbf16, #tpu.memory_space<vmem>>, vector<32x256xbf16>
    tpu.vector_store %arg5[%c96, %c0_8], %19 {strides = array<i32>} : memref<384x256xbf16, #tpu.memory_space<vmem>>, vector<32x256xbf16>,
    %21 = vector.extract_strided_slice %12 {offsets = [0, 13], sizes = [32, 256], strides = [1, 1]} : vector<32x384xbf16> to vector<32x256xbf16>
    %c128 = arith.constant 128 : index
    %c0_9 = arith.constant 0 : index
    %22 = vector.load %arg5[%c128, %c0_9] : memref<384x256xbf16, #tpu.memory_space<vmem>>, vector<32x256xbf16>
    tpu.vector_store %arg5[%c128, %c0_9], %21 {strides = array<i32>} : memref<384x256xbf16, #tpu.memory_space<vmem>>, vector<32x256xbf16>,
    %23 = vector.extract_strided_slice %12 {offsets = [0, 14], sizes = [32, 256], strides = [1, 1]} : vector<32x384xbf16> to vector<32x256xbf16>
    %c160 = arith.constant 160 : index
    %c0_10 = arith.constant 0 : index
    %24 = vector.load %arg5[%c160, %c0_10] : memref<384x256xbf16, #tpu.memory_space<vmem>>, vector<32x256xbf16>
    tpu.vector_store %arg5[%c160, %c0_10], %23 {strides = array<i32>} : memref<384x256xbf16, #tpu.memory_space<vmem>>, vector<32x256xbf16>,
    %25 = vector.extract_strided_slice %12 {offsets = [0, 24], sizes = [32, 256], strides = [1, 1]} : vector<32x384xbf16> to vector<32x256xbf16>
    %c192 = arith.constant 192 : index
    %c0_11 = arith.constant 0 : index
    %26 = vector.load %arg5[%c192, %c0_11] : memref<384x256xbf16, #tpu.memory_space<vmem>>, vector<32x256xbf16>
    tpu.vector_store %arg5[%c192, %c0_11], %25 {strides = array<i32>} : memref<384x256xbf16, #tpu.memory_space<vmem>>, vector<32x256xbf16>,
    %27 = vector.extract_strided_slice %12 {offsets = [0, 25], sizes = [32, 256], strides = [1, 1]} : vector<32x384xbf16> to vector<32x256xbf16>
    %c224 = arith.constant 224 : index
    %c0_12 = arith.constant 0 : index
    %28 = vector.load %arg5[%c224, %c0_12] : memref<384x256xbf16, #tpu.memory_space<vmem>>, vector<32x256xbf16>
    tpu.vector_store %arg5[%c224, %c0_12], %27 {strides = array<i32>} : memref<384x256xbf16, #tpu.memory_space<vmem>>, vector<32x256xbf16>,
    %29 = vector.extract_strided_slice %12 {offsets = [0, 26], sizes = [32, 256], strides = [1, 1]} : vector<32x384xbf16> to vector<32x256xbf16>
    %c256 = arith.constant 256 : index
    %c0_13 = arith.constant 0 : index
    %30 = vector.load %arg5[%c256, %c0_13] : memref<384x256xbf16, #tpu.memory_space<vmem>>, vector<32x256xbf16>
    tpu.vector_store %arg5[%c256, %c0_13], %29 {strides = array<i32>} : memref<384x256xbf16, #tpu.memory_space<vmem>>, vector<32x256xbf16>,
    %31 = tpu.iota {dimensions = array<i32: 0>} : vector<96x256xi32>
    %c0_i32 = arith.constant 0 : i32
    %32 = vector.broadcast %c0_i32 : i32 to vector<96x256xi32>
    %33 = arith.cmpi eq, %31, %32 : vector<96x256xi32>
    %cst_14 = arith.constant 1.000000e+00 : f32
    %cst_15 = arith.constant 0.000000e+00 : f32
    %34 = vector.broadcast %cst_14 : f32 to vector<96x256xf32>
    %35 = vector.broadcast %cst_15 : f32 to vector<96x256xf32>
    %36 = arith.select %33, %34, %35 : vector<96x256xi1>, vector<96x256xf32>
    %37 = arith.truncf %36 : vector<96x256xf32> to vector<96x256xbf16>
    %c288 = arith.constant 288 : index
    %c0_16 = arith.constant 0 : index
    %38 = vector.load %arg5[%c288, %c0_16] : memref<384x256xbf16, #tpu.memory_space<vmem>>, vector<96x256xbf16>
    tpu.vector_store %arg5[%c288, %c0_16], %37 {strides = array<i32>} : memref<384x256xbf16, #tpu.memory_space<vmem>>, vector<96x256xbf16>,
    %c0_17 = arith.constant 0 : index
    %c0_18 = arith.constant 0 : index
    %c0_19 = arith.constant 0 : index
    %39 = vector.load %arg3[%c0_17, %c0_18, %c0_19] : memref<1x128x384xbf16, #tpu.memory_space<vmem>>, vector<1x128x384xbf16>
    %40 = vector.shape_cast %39 : vector<1x128x384xbf16> to vector<128x384xbf16>
    %c0_20 = arith.constant 0 : index
    %c0_21 = arith.constant 0 : index
    %41 = vector.load %arg5[%c0_20, %c0_21] : memref<384x256xbf16, #tpu.memory_space<vmem>>, vector<384x256xbf16>
    %cst_22 = arith.constant dense<0.000000e+00> : vector<128x256xf32>
    %42 = tpu.matmul %40, %41, %cst_22 {dimension_numbers = #tpu.dot_dimension_numbers<[1], [0], [0], [1], [0, 0, 1, 1], [], []>} : vector<128x384xbf16>, vector<384x256xbf16>, vector<128x256xf32> -> vector<128x256xf32>
    %c0_23 = arith.constant 0 : index
    %c0_24 = arith.constant 0 : index
    %c0_25 = arith.constant 0 : index
    %c0_26 = arith.constant 0 : index
    %43 = vector.load %arg4[%c0_23, %c0_24, %c0_25, %c0_26] : memref<1x1x128x256xf32, #tpu.memory_space<vmem>>, vector<1x1x128x256xf32>
    %44 = vector.shape_cast %43 : vector<1x1x128x256xf32> to vector<128x256xf32>
    %45 = vector.shape_cast %42 : vector<128x256xf32> to vector<1x1x128x256xf32>
    tpu.vector_store %arg4[%c0_23, %c0_24, %c0_25, %c0_26], %45 {strides = array<i32>} : memref<1x1x128x256xf32, #tpu.memory_space<vmem>>, vector<1x1x128x256xf32>,
    return
  }
  func.func @transform_0(%arg0: i32, %arg1: i32) -> (i32, i32, i32, i32) {
    %c0_i32 = arith.constant 0 : i32
    %c0_i32_0 = arith.constant 0 : i32
    %c0_i32_1 = arith.constant 0 : i32
    return %arg0, %arg1, %c0_i32, %c0_i32_0 : i32, i32, i32, i32
  }
  func.func @transform_1(%arg0: i32, %arg1: i32) -> (i32, i32, i32) {
    %c0_i32 = arith.constant 0 : i32
    %c0_i32_0 = arith.constant 0 : i32
    %c0_i32_1 = arith.constant 0 : i32
    return %arg0, %c0_i32, %c0_i32_0 : i32, i32, i32
  }
  func.func @transform_2(%arg0: i32, %arg1: i32) -> (i32, i32, i32, i32) {
    %c0_i32 = arith.constant 0 : i32
    %c0_i32_0 = arith.constant 0 : i32
    %c0_i32_1 = arith.constant 0 : i32
    return %arg0, %arg1, %c0_i32, %c0_i32_0 : i32, i32, i32, i32
  }
}

</mosaic_0001>

<bundles_post_ra>
// kernel: dsod_forward.1
= control target key start
LH: loop header
LB: loop body
LE: loop exit
PB: predicated region body
PF: predicated region fallthrough
CT: control target
= control target key end

     0   :  { %s1404_s9 = smov 0   ;;  %s1406_s10 = smov 0   ;;  %s1633_s0 = inlined_call_operand.vmem [shape: bf16[6,2,32,384], index: 0, kind: input, shape index: {}]   ;;  %s1634_s1 = inlined_call_operand.vmem [shape: bf16[6,128,384], index: 1, kind: input, shape index: {}]   ;;  %s1635_s2 = inlined_call_operand.vmem [shape: f32[6,2,128,256], index: 2, kind: output, shape index: {}]  }
   0x1   :  { %s1408_s11 = smov 0   ;;  %s1410_s12 = smov 0  }
   0x2   :  { %s1412_s13 = smov 0  }
   0x3 LB: > { %s21_s14 = sadd.s32 1, %s1366_s11  ;;  %s24_s15 = sadd.s32 1, %s1370_s12  ;;  %s1374_s13 = sphi %s1412_s13, %s12_s13   ;;  %s1370_s12 = sphi %s1410_s12, %s1639_s12   ;;  %s1366_s11 = sphi %s1408_s11, %s1638_s11   ;;  %s1362_s10 = sphi %s1406_s10, %s1637_s10   ;;  %s1358_s9 = sphi %s1404_s9, %s1636_s9  }
   0x4   : > { %p22_p0 = scmp.ge.s32.totalorder %s21_s14, 2  ;;  %p1147_p1 = scmp.ge.s32.totalorder %s1374_s13, 1 }
   0x5   : > { %p142_p2 = scmp.lt.s32.totalorder %s1374_s13, 13 }
   0x6   : > { %s1641_s14 = smov (%p22_p0, %s21_s14), 0  ;;  %s1643_s15 = smov (!%p22_p0, %s24_s15), %s1370_s12 }
   0x7   : > { %p143_p3 = pnand %p1147_p1, %p142_p2  ;;  %p26_p4 = scmp.ge.s32.totalorder %s1643_s15, 6 }
   0x8   : > { %p177_p5 = scmp.lt.s32.totalorder (!%p143_p3), %s1362_s10, 5  ;;  %p179_p6 = scmp.lt.s32.totalorder (!%p143_p3), %s1358_s9, 1  ;;  %v1376_v25 = vmov (!%p143_p3), 1935823168   ;;  %v1346_v28 = vlaneseq (!%p143_p3)  ;;  %vm327_vm6 = vcmask (!%p143_p3), 1039360   ;;  %vm352_vm7 = vcmask (!%p143_p3), 1031168  }
   0x9   : > { %s1645_s15 = smov (%p26_p4, %s1643_s15), 0  ;;  %146 = sbr.rel (%p143_p3) target bundleno = 568 (0x238), region = 28 }
   0xa   : > { %v1344_v26 = vunpack.c.l.s4 (!%p143_p3), %v1376_v25  ;;  %v1481_v29 = vshrl.u32 (!%p143_p3), %v1346_v28, 7  ;;  %s1377_s23 = smov (!%p143_p3), 127   ;;  %s1378_s24 = smov (!%p143_p3), 126   ;;  %vm377_vm8 = vcmask (!%p143_p3), 949248   ;;  %vm402_vm9 = vcmask (!%p143_p3), 941056  }
   0xb   : > { %s1379_s25 = smov (!%p143_p3), 116   ;;  %s1380_s26 = smov (!%p143_p3), 115   ;;  %vm427_vm10 = vcmask (!%p143_p3), 932864   ;;  %vm452_vm11 = vcmask (!%p143_p3), 850944   ;;  %vm502_vm12 = vcmask (!%p143_p3), 834560   ;;  %vm477_vm13 = vcmask (!%p143_p3), 842752  }
   0xc   : > { %v1345_v27 = vunpack.c.0.s8 (!%p143_p3), %v1344_v26  ;;  %s1381_s27 = smov (!%p143_p3), 114   ;;  %s1382_s28 = smov (!%p143_p3), 104   ;;  %vm528_vm14 = vcmp.eq.s32.totalorder (!%p143_p3), %v1481_v29, 0  ;;  %vm1388_vm15 = vmmov (!%p143_p3), 1  }
   0xd   : > { %s1383_s29 = smov (!%p143_p3), 102   ;;  %s1384_s30 = smov (!%p143_p3), 103  }
   0xe   : > { %v1348_v30 = vsub.s32 (!%p143_p3), %v1345_v27, %v1481_v29 }
  0x10   : > { %s1647_s10 = smov (!%p177_p5, %s1362_s10), 5  ;;  %s1649_s9 = smov (!%p179_p6, %s1358_s9), 1 }
  0x11   : > { %s1218_s16 = smul.u32 24, %s1647_s10  ;;  %s1150_s7 = sshll.u32 %s1649_s9, 5 }
  0x12   : > { %s1217_s17 = smul.u32 12, %s1649_s9  ;;  %s1151_s8 = sshll.u32 %s1647_s10, 6 }
  0x13   : > { %s1219_s3 = smul.u32 192, %s1647_s10 }
  0x14   : > { %s183_s18 = sadd.s32 %s1218_s16, %s1217_s17  ;;  %s197_s16 = sadd.s32 %s1151_s8, %s1150_s7 }
  0x15   : > { %s1148_s19 = sshll.u32 %s183_s18, 2  ;;  %s1530_s6 = scalar_lea.vmem %s1634_s1, %s1219_s3 }
  0x16   : > { %s185_s22 = scalar_lea.vmem %s1633_s0, %s1148_s19  ;;  %s1152_s17 = sshll.u32 %s197_s16, 3 }
  0x17   : > { %v1443_v0 = vld [vmem:[%s185_s22] sm:$0xff]  ;;  %v1445_v1 = vld [vmem:[%s185_s22 + $0xc] sm:$0xff]  ;;  %v1447_v2 = vld [vmem:[%s185_s22 + $0x18] sm:$0xff]  ;;  %s1584_s20 = scalar_lea.vmem %s1635_s2, %s1152_s17 }
  0x18   : > { %v1449_v3 = vld [vmem:[%s185_s22 + $0x24] sm:$0xff]  ;;  %v210_v4 = vunpack.c.h.bf16 %v1443_v0  ;;  %v213_v5 = vunpack.c.h.bf16 %v1445_v1  ;;  %v216_v6 = vunpack.c.h.bf16 %v1447_v2  ;;  %v209_v7 = vunpack.c.l.bf16 %v1443_v0  ;;  %v206_v13 = vld [vmem:[%s185_s22 + $0x20] ss:$12 sps:$4 sm:$0xff]  }
  0x19   : > { %v219_v8 = vunpack.c.h.bf16 %v1449_v3  ;;  %v212_v9 = vunpack.c.l.bf16 %v1445_v1  ;;  %v215_v10 = vunpack.c.l.bf16 %v1447_v2  ;;  %v218_v11 = vunpack.c.l.bf16 %v1449_v3  ;;  %v202_v12 = vld [vmem:[%s185_s22 + $0x8] ss:$12 sps:$4 sm:$0xff]  }
  0x1a   : > { %1336 = vmul.bf16.f32.vacc0 %v1443_v0, %v1443_v0  ;;  %v1463_v14 = vunpack.c.l.bf16 %v202_v12  ;;  %v1465_v15 = vunpack.c.h.bf16 %v202_v12  ;;  %v1467_v16 = vunpack.c.l.bf16 %v206_v13 }
  0x1b   : > { %1337 = vmac.bf16.f32.vacc0 %v1445_v1, %v1445_v1  ;;  %v1469_v17 = vunpack.c.h.bf16 %v206_v13 }
  0x1c   : > { %1338 = vmac.bf16.f32.vacc0 %v1447_v2, %v1447_v2  ;;  %v223_v18 = vmul.f32 %v1463_v14, %v1463_v14  ;;  %v226_v19 = vmul.f32 %v1465_v15, %v1465_v15  ;;  %v229_v20 = vmul.f32 %v1467_v16, %v1467_v16 }
  0x1d   : > { %1339 = vmac.bf16.f32.vacc0 %v1449_v3, %v1449_v3  ;;  %v232_v33 = vmul.f32 %v1469_v17, %v1469_v17 }
  0x1e   : > { %v251_v34 = vadd.f32 %v226_v19, %v223_v18 }
  0x1f   : > { %v1340_v21 = vmovacc.add.low.vacc0 }
  0x20   : > { %v1341_v22 = vmovacc.add.high.vacc0  ;;  %v252_v36 = vadd.f32 %v251_v34, %v229_v20 }
  0x22   : > { %v1342_v23 = vcombine.low %v1340_v21, %v1341_v22  ;;  %v1343_v24 = vcombine.high %v1340_v21, %v1341_v22  ;;  %v253_v39 = vadd.f32 %v252_v36, %v232_v33 }
  0x24   : > { %v1349_v31 = vrot.slane %v1342_v23, %v1348_v30  ;;  %v1355_v32 = vrot.slane %v1343_v24, %v1348_v30  ;;  %v254_v42 = vrot.slane %v253_v39, 4 }
  0x26   : > { %v245_v35 = vrot.slane %v1355_v32, 4  ;;  %v236_v37 = vrot.slane %v1349_v31, 4  ;;  %v255_v45 = vadd.f32 %v254_v42, %v253_v39 }
  0x28   : > { %v246_v38 = vadd.f32 %v1355_v32, %v245_v35  ;;  %v237_v40 = vadd.f32 %v1349_v31, %v236_v37  ;;  %v256_v48 = vrot.slane %v255_v45, 2 }
  0x2a   : > { %v247_v41 = vrot.slane %v246_v38, 2  ;;  %v238_v43 = vrot.slane %v237_v40, 2  ;;  %v257_v51 = vadd.f32 %v256_v48, %v255_v45 }
  0x2c   : > { %v248_v44 = vadd.f32 %v247_v41, %v246_v38  ;;  %v239_v46 = vadd.f32 %v238_v43, %v237_v40  ;;  %v258_v53 = vrot.slane %v257_v51, 1 }
  0x2e   : > { %v249_v47 = vrot.slane %v248_v44, 1  ;;  %v240_v49 = vrot.slane %v239_v46, 1  ;;  %v259_v54 = vadd.f32 %v258_v53, %v257_v51 }
  0x30   : > { %v250_v50 = vadd.f32 %v249_v47, %v248_v44  ;;  %v241_v52 = vadd.f32 %v240_v49, %v239_v46  ;;  %vm276_vm4 = vcmp.eq.f32.partialorder %v259_v54, inf  ;;  %v279_v20 = vand.u32 2147483648, %v259_v54 }
  0x31   : > { %vm278_vm5 = vcmp.eq.f32.partialorder %v259_v54, 0.0 }
  0x32   : > { %1304 = vrsqrt.f32 %v250_v50  ;;  %vm269_vm0 = vcmp.eq.f32.partialorder %v250_v50, inf  ;;  %v272_v56 = vand.u32 2147483648, %v250_v50  ;;  %vm271_vm1 = vcmp.eq.f32.partialorder %v250_v50, 0.0 }
  0x33   : > { %1306 = vrsqrt.f32 %v241_v52  ;;  %vm262_vm2 = vcmp.eq.f32.partialorder %v241_v52, inf  ;;  %v265_v59 = vand.u32 2147483648, %v241_v52  ;;  %vm264_vm3 = vcmp.eq.f32.partialorder %v241_v52, 0.0 }
  0x34   : > { %1308 = vrsqrt.f32 %v259_v54 }
  0x3c   : > { %v1305_v55 = vpop.eup %1304 }
  0x3d   : > { %v1307_v57 = vpop.eup %1306  ;;  %v268_v58 = vmul.f32 %v1305_v55, %v250_v50 }
  0x3e   : > { %v261_v60 = vmul.f32 %v1307_v57, %v241_v52  ;;  %v1309_v18 = vpop.eup %1308 }
  0x3f   : > { %v270_v61 = vsel %vm269_vm0, %v250_v50, %v268_v58  ;;  %v275_v21 = vmul.f32 %v1309_v18, %v259_v54  ;;  %vm1179_vm0 = vmpackc.low %vm1388_vm15, %vm528_vm14 }
  0x40   : > { %v273_v62 = vsel %vm271_vm1, %v272_v56, %v270_v61  ;;  %v263_v63 = vsel %vm262_vm2, %v241_v52, %v261_v60 }
  0x41   : > { %v282_v12 = vadd.f32 1e-10, %v273_v62  ;;  %v266_v13 = vsel %vm264_vm3, %v265_v59, %v263_v63  ;;  %v277_v22 = vsel %vm276_vm4, %v259_v54, %v275_v21 }
  0x42   : > { %v281_v19 = vadd.f32 1e-10, %v266_v13  ;;  %v280_v23 = vsel %vm278_vm5, %v279_v20, %v277_v22 }
  0x43   : > { %1310 = vrcp.f32 %v282_v12  ;;  %v283_v24 = vadd.f32 1e-10, %v280_v23 }
  0x44   : > { %1312 = vrcp.f32 %v281_v19 }
  0x45   : > { %1314 = vrcp.f32 %v283_v24 }
  0x4d   : > { %v1311_v25 = vpop.eup %1310 }
  0x4e   : > { %v1313_v26 = vpop.eup %1312  ;;  %v288_v27 = vmul.f32 %v1311_v25, %v210_v4  ;;  %v291_v28 = vmul.f32 %v1311_v25, %v213_v5  ;;  %v294_v30 = vmul.f32 %v1311_v25, %v216_v6  ;;  %v297_v31 = vmul.f32 %v1311_v25, %v219_v8 }
  0x4f   : > { %v287_v32 = vmul.f32 %v1313_v26, %v209_v7  ;;  %v290_v33 = vmul.f32 %v1313_v26, %v212_v9  ;;  %v293_v4 = vmul.f32 %v1313_v26, %v215_v10  ;;  %v296_v5 = vmul.f32 %v1313_v26, %v218_v11  ;;  %v1315_v8 = vpop.eup %1314 }
  0x50   : > { %v300_v34 = vpack.c.bf16 %v291_v28, %v288_v27  ;;  %v1504_v6 = vpack.c.bf16 %v297_v31, %v294_v30  ;;  %v289_v0 = vmul.f32 %v1315_v8, %v1463_v14  ;;  %v292_v1 = vmul.f32 %v1315_v8, %v1465_v15  ;;  %v1274_v14 = vld [vmem:[%s1530_s6 + $0x4] ss:$12 sps:$4 sm:$0xff]  }
  0x51   : > { %v1498_v35 = vpack.c.bf16 %v290_v33, %v287_v32  ;;  %v295_v2 = vmul.f32 %v1315_v8, %v1467_v16  ;;  %v298_v7 = vmul.f32 %v1315_v8, %v1469_v17  ;;  %v302_v3 = vpack.c.bf16 %v296_v5, %v293_v4  ;;  %810 = vmatprep.mubr.bf16.mxu1 %v1274_v14 }
  0x52   : > { %317 = vrot.lane.b32.xlu0 %v300_v34, %s1377_s23  ;;  %778 = vmatprep.subr.bf16.mxu1 %v300_v34  ;;  %v301_v9 = vpack.c.bf16 %v292_v1, %v289_v0  ;;  %v1385_v11 = vmov 0  }
  0x53   : > { %315 = vrot.lane.b32.xlu1 %v1498_v35, %s1377_s23  ;;  %779 = vmatpush1.bf16.msra.mxu1 %v1498_v35  ;;  %v304_v10 = vpack.c.bf16 %v298_v7, %v295_v2 }
  0x54   : > { %780 = vmatprep.subr.bf16.mxu1 %v1504_v6  ;;  %923 = vmatprep.mubr.bf16.mxu0 %v1385_v11 }
  0x56   : > { %319 = vrot.lane.b32.xlu0 %v301_v9, %s1377_s23 }
  0x57   : > { %323 = vrot.lane.b32.xlu1 %v1504_v6, %s1377_s23  ;;  %781 = vmatpush1.bf16.msra.mxu1 %v302_v3 }
  0x5a   : > { %325 = vrot.lane.b32.xlu0 %v304_v10, %s1377_s23 }
  0x5b   : > { %321 = vrot.lane.b32.xlu1 %v302_v3, %s1377_s23 }
  0x5e   : > { %342 = vrot.lane.b32.xlu0 %v300_v34, %s1378_s24 }
  0x5f   : > { %344 = vrot.lane.b32.xlu1 %v301_v9, %s1378_s24 }
  0x62   : > { %340 = vrot.lane.b32.xlu0 %v1498_v35, %s1378_s24 }
  0x63   : > { %348 = vrot.lane.b32.xlu1 %v1504_v6, %s1378_s24 }
  0x66   : > { %350 = vrot.lane.b32.xlu0 %v304_v10, %s1378_s24 }
  0x67   : > { %346 = vrot.lane.b32.xlu1 %v302_v3, %s1378_s24 }
  0x6a   : > { %367 = vrot.lane.b32.xlu0 %v300_v34, %s1379_s25 }
  0x6b   : > { %369 = vrot.lane.b32.xlu1 %v301_v9, %s1379_s25 }
  0x6e   : > { %365 = vrot.lane.b32.xlu0 %v1498_v35, %s1379_s25 }
  0x6f   : > { %373 = vrot.lane.b32.xlu1 %v1504_v6, %s1379_s25 }
  0x72   : > { %375 = vrot.lane.b32.xlu0 %v304_v10, %s1379_s25 }
  0x73   : > { %371 = vrot.lane.b32.xlu1 %v302_v3, %s1379_s25 }
  0x76   : > { %392 = vrot.lane.b32.xlu0 %v300_v34, %s1380_s26 }
  0x77   : > { %394 = vrot.lane.b32.xlu1 %v301_v9, %s1380_s26 }
  0x7a   : > { %390 = vrot.lane.b32.xlu0 %v1498_v35, %s1380_s26 }
  0x7b   : > { %398 = vrot.lane.b32.xlu1 %v1504_v6, %s1380_s26 }
  0x7e   : > { %400 = vrot.lane.b32.xlu0 %v304_v10, %s1380_s26 }
  0x7f   : > { %396 = vrot.lane.b32.xlu1 %v302_v3, %s1380_s26 }
  0x82   : > { %417 = vrot.lane.b32.xlu0 %v300_v34, %s1381_s27 }
  0x83   : > { %419 = vrot.lane.b32.xlu1 %v301_v9, %s1381_s27 }
  0x86   : > { %415 = vrot.lane.b32.xlu0 %v1498_v35, %s1381_s27 }
  0x87   : > { %423 = vrot.lane.b32.xlu1 %v1504_v6, %s1381_s27 }
  0x8a   : > { %425 = vrot.lane.b32.xlu0 %v304_v10, %s1381_s27 }
  0x8b   : > { %421 = vrot.lane.b32.xlu1 %v302_v3, %s1381_s27 }
  0x8e   : > { %442 = vrot.lane.b32.xlu0 %v300_v34, %s1382_s28 }
  0x8f   : > { %444 = vrot.lane.b32.xlu1 %v301_v9, %s1382_s28 }
  0x92   : > { %440 = vrot.lane.b32.xlu0 %v1498_v35, %s1382_s28 }
  0x93   : > { %448 = vrot.lane.b32.xlu1 %v1504_v6, %s1382_s28 }
  0x96   : > { %450 = vrot.lane.b32.xlu0 %v304_v10, %s1382_s28 }
  0x97   : > { %492 = vrot.lane.b32.xlu1 %v300_v34, %s1383_s29 }
  0x9a   : > { %494 = vrot.lane.b32.xlu0 %v301_v9, %s1383_s29 }
  0x9b   : > { %446 = vrot.lane.b32.xlu1 %v302_v3, %s1382_s28 }
  0x9e   : > { %490 = vrot.lane.b32.xlu0 %v1498_v35, %s1383_s29 }
  0x9f   : > { %467 = vrot.lane.b32.xlu1 %v300_v34, %s1384_s30 }
  0xa2   : > { %469 = vrot.lane.b32.xlu0 %v301_v9, %s1384_s30 }
  0xa3   : > { %498 = vrot.lane.b32.xlu1 %v1504_v6, %s1383_s29 }
  0xa6   : > { %500 = vrot.lane.b32.xlu0 %v304_v10, %s1383_s29 }
  0xa7   : > { %465 = vrot.lane.b32.xlu1 %v1498_v35, %s1384_s30 }
  0xaa   : > { %496 = vrot.lane.b32.xlu0 %v302_v3, %s1383_s29 }
  0xab   : > { %473 = vrot.lane.b32.xlu1 %v1504_v6, %s1384_s30 }
  0xae   : > { %475 = vrot.lane.b32.xlu0 %v304_v10, %s1384_s30 }
  0xaf   : > { %471 = vrot.lane.b32.xlu1 %v302_v3, %s1384_s30 }
  0xc4   : > { %v318_v15 = vpop.permute.xlu0 %317 }
  0xc5   : > { %v316_v16 = vpop.permute.xlu1 %315 }
  0xc6   : > { %v328_v38 = vsel %vm327_vm6, %v316_v16, %v318_v15 }
  0xc8   : > { %v320_v36 = vpop.permute.xlu0 %319 }
  0xc9   : > { %v324_v17 = vpop.permute.xlu1 %323  ;;  %v329_v37 = vsel %vm327_vm6, %v318_v15, %v320_v36 }
  0xca   : > { %782 = vmatprep.subr.bf16.mxu1 %v329_v37 }
  0xcb   : > { %783 = vmatpush1.bf16.msra.mxu1 %v328_v38 }
  0xcc   : > { %v326_v40 = vpop.permute.xlu0 %325 }
  0xcd   : > { %v322_v39 = vpop.permute.xlu1 %321  ;;  %v331_v42 = vsel %vm327_vm6, %v324_v17, %v326_v40 }
  0xce   : > { %v330_v41 = vsel %vm327_vm6, %v322_v39, %v324_v17  ;;  %784 = vmatprep.subr.bf16.mxu1 %v331_v42 }
  0xcf   : > { %785 = vmatpush1.bf16.msra.mxu1 %v330_v41 }
  0xd0   : > { %v343_v44 = vpop.permute.xlu0 %342 }
  0xd1   : > { %v345_v43 = vpop.permute.xlu1 %344 }
  0xd2   : > { %v354_v45 = vsel %vm352_vm7, %v343_v44, %v345_v43 }
  0xd3   : > { %786 = vmatprep.subr.bf16.mxu1 %v354_v45  ;;  %v1386_v45 = vmov 0.0  }
  0xd4   : > { %v341_v47 = vpop.permute.xlu0 %340 }
  0xd5   : > { %v349_v46 = vpop.permute.xlu1 %348  ;;  %v353_v48 = vsel %vm352_vm7, %v341_v47, %v343_v44 }
  0xd6   : > { %787 = vmatpush1.bf16.msra.mxu1 %v353_v48 }
  0xd8   : > { %v351_v50 = vpop.permute.xlu0 %350 }
  0xd9   : > { %v347_v49 = vpop.permute.xlu1 %346  ;;  %v356_v52 = vsel %vm352_vm7, %v349_v46, %v351_v50 }
  0xda   : > { %v355_v51 = vsel %vm352_vm7, %v347_v49, %v349_v46  ;;  %788 = vmatprep.subr.bf16.mxu1 %v356_v52  ;;  %v1387_v46 = vmov 1.0  }
  0xdb   : > { %789 = vmatpush1.bf16.msra.mxu1 %v355_v51  ;;  %v1180_v47 = vpack.c.bf16 %v1386_v45, %v1387_v46 }
  0xdc   : > { %v368_v54 = vpop.permute.xlu0 %367 }
  0xdd   : > { %v370_v53 = vpop.permute.xlu1 %369 }
  0xde   : > { %v379_v55 = vsel %vm377_vm8, %v368_v54, %v370_v53  ;;  %v1275_v53 = vld [vmem:[%s1530_s6 + $0x8] ss:$12 sps:$4 sm:$0xff]  }
  0xdf   : > { %790 = vmatprep.subr.bf16.mxu1 %v379_v55  ;;  %v1276_v55 = vld [vmem:[%s1530_s6 + $0x1c] ss:$12 sps:$4 sm:$0xff]  }
  0xe0   : > { %v366_v57 = vpop.permute.xlu0 %365 }
  0xe1   : > { %v374_v56 = vpop.permute.xlu1 %373  ;;  %v378_v58 = vsel %vm377_vm8, %v366_v57, %v368_v54  ;;  %v1272_v54 = vld [vmem:[%s1530_s6] ss:$12 sps:$4 sm:$0xff]   ;;  %v1279_v57 = vld [vmem:[%s1530_s6 + $0x18] ss:$12 sps:$4 sm:$0xff]  }
  0xe2   : > { %791 = vmatpush1.bf16.msra.mxu1 %v378_v58  ;;  %v1280_v58 = vld [vmem:[%s1530_s6 + $0x34] ss:$12 sps:$4 sm:$0xff]  }
  0xe4   : > { %v376_v60 = vpop.permute.xlu0 %375 }
  0xe5   : > { %v372_v59 = vpop.permute.xlu1 %371  ;;  %v381_v62 = vsel %vm377_vm8, %v374_v56, %v376_v60  ;;  %v1283_v60 = vld [vmem:[%s1530_s6 + $0x30] ss:$12 sps:$4 sm:$0xff]  }
  0xe6   : > { %v380_v61 = vsel %vm377_vm8, %v372_v59, %v374_v56  ;;  %792 = vmatprep.subr.bf16.mxu1 %v381_v62  ;;  %v1278_v56 = vld [vmem:[%s1530_s6 + $0x20] ss:$12 sps:$4 sm:$0xff]   ;;  %v1282_v59 = vld [vmem:[%s1530_s6 + $0x38] ss:$12 sps:$4 sm:$0xff]   ;;  %v1286_v62 = vld [vmem:[%s1530_s6 + $0x50] ss:$12 sps:$4 sm:$0xff]  }
  0xe7   : > { %793 = vmatpush1.bf16.msra.mxu1 %v380_v61  ;;  %v1284_v61 = vld [vmem:[%s1530_s6 + $0x4c] ss:$12 sps:$4 sm:$0xff]  }
  0xe8   : > { %v393_v12 = vpop.permute.xlu0 %392 }
  0xe9   : > { %v395_v63 = vpop.permute.xlu1 %394 }
  0xea   : > { %v404_v13 = vsel %vm402_vm9, %v393_v12, %v395_v63  ;;  %v1287_v63 = vld [vmem:[%s1530_s6 + $0x48] ss:$12 sps:$4 sm:$0xff]  }
  0xeb   : > { %794 = vmatprep.subr.bf16.mxu1 %v404_v13  ;;  %v1290_v13 = vld [vmem:[%s1530_s6 + $0x68] ss:$12 sps:$4 sm:$0xff]  }
  0xec   : > { %v391_v19 = vpop.permute.xlu0 %390 }
  0xed   : > { %v399_v18 = vpop.permute.xlu1 %398  ;;  %v403_v20 = vsel %vm402_vm9, %v391_v19, %v393_v12  ;;  %v1288_v12 = vld [vmem:[%s1530_s6 + $0x64] ss:$12 sps:$4 sm:$0xff]   ;;  %v1292_v19 = vld [vmem:[%s1530_s6 + $0x7c] ss:$12 sps:$4 sm:$0xff]  }
  0xee   : > { %795 = vmatpush1.bf16.msra.mxu1 %v403_v20  ;;  %v1294_v20 = vld [vmem:[%s1530_s6 + $0x80] ss:$12 sps:$4 sm:$0xff]  }
  0xf0   : > { %v401_v22 = vpop.permute.xlu0 %400 }
  0xf1   : > { %v397_v21 = vpop.permute.xlu1 %396  ;;  %v406_v24 = vsel %vm402_vm9, %v399_v18, %v401_v22  ;;  %v1296_v22 = vld [vmem:[%s1530_s6 + $0x94] ss:$12 sps:$4 sm:$0xff]  }
  0xf2   : > { %v405_v23 = vsel %vm402_vm9, %v397_v21, %v399_v18  ;;  %796 = vmatprep.subr.bf16.mxu1 %v406_v24  ;;  %v1291_v18 = vld [vmem:[%s1530_s6 + $0x60] ss:$12 sps:$4 sm:$0xff]   ;;  %v1295_v21 = vld [vmem:[%s1530_s6 + $0x78] ss:$12 sps:$4 sm:$0xff]   ;;  %v1299_v24 = vld [vmem:[%s1530_s6 + $0x90] ss:$12 sps:$4 sm:$0xff]  }
  0xf3   : > { %797 = vmatpush1.bf16.msra.mxu1 %v405_v23  ;;  %v1298_v23 = vld [vmem:[%s1530_s6 + $0x98] ss:$12 sps:$4 sm:$0xff]  }
  0xf4   : > { %v418_v26 = vpop.permute.xlu0 %417 }
  0xf5   : > { %v420_v25 = vpop.permute.xlu1 %419 }
  0xf6   : > { %v429_v27 = vsel %vm427_vm10, %v418_v26, %v420_v25  ;;  %v1300_v25 = vld [vmem:[%s1530_s6 + $0xac] ss:$12 sps:$4 sm:$0xff]  }
  0xf7   : > { %798 = vmatprep.subr.bf16.mxu1 %v429_v27  ;;  %v1303_v27 = vld [vmem:[%s1530_s6 + $0xa8] ss:$12 sps:$4 sm:$0xff]  }
  0xf8   : > { %v416_v30 = vpop.permute.xlu0 %415 }
  0xf9   : > { %v424_v28 = vpop.permute.xlu1 %423  ;;  %v428_v31 = vsel %vm427_vm10, %v416_v30, %v418_v26  ;;  %v1302_v26 = vld [vmem:[%s1530_s6 + $0xb0] ss:$12 sps:$4 sm:$0xff]  }
  0xfa   : > { %799 = vmatpush1.bf16.msra.mxu1 %v428_v31 }
  0xfc   : > { %v426_v33 = vpop.permute.xlu0 %425 }
  0xfd   : > { %v422_v32 = vpop.permute.xlu1 %421  ;;  %v431_v35 = vsel %vm427_vm10, %v424_v28, %v426_v33 }
  0xfe   : > { %v430_v34 = vsel %vm427_vm10, %v422_v32, %v424_v28  ;;  %800 = vmatprep.subr.bf16.mxu1 %v431_v35 }
  0xff   : > { %801 = vmatpush1.bf16.msra.mxu1 %v430_v34 }
 0x100   : > { %v443_v5 = vpop.permute.xlu0 %442 }
 0x101   : > { %v445_v4 = vpop.permute.xlu1 %444 }
 0x102   : > { %v454_v6 = vsel %vm452_vm11, %v443_v5, %v445_v4 }
 0x103   : > { %802 = vmatprep.subr.bf16.mxu1 %v454_v6 }
 0x104   : > { %v441_v0 = vpop.permute.xlu0 %440 }
 0x105   : > { %v449_v8 = vpop.permute.xlu1 %448  ;;  %v453_v1 = vsel %vm452_vm11, %v441_v0, %v443_v5 }
 0x106   : > { %803 = vmatpush1.bf16.msra.mxu1 %v453_v1 }
 0x108   : > { %v451_v7 = vpop.permute.xlu0 %450 }
 0x109   : > { %v493_v2 = vpop.permute.xlu1 %492  ;;  %v456_v3 = vsel %vm452_vm11, %v449_v8, %v451_v7 }
 0x10a   : > { %804 = vmatprep.subr.bf16.mxu1 %v456_v3 }
 0x10c   : > { %v495_v10 = vpop.permute.xlu0 %494 }
 0x10d   : > { %v447_v9 = vpop.permute.xlu1 %446  ;;  %v504_v15 = vsel %vm502_vm12, %v493_v2, %v495_v10 }
 0x10e   : > { %v455_v14 = vsel %vm452_vm11, %v447_v9, %v449_v8  ;;  %891 = vmatprep.subr.bf16.mxu0 %v504_v15 }
 0x10f   : > { %805 = vmatpush1.bf16.msra.mxu1 %v455_v14 }
 0x110   : > { %v491_v17 = vpop.permute.xlu0 %490 }
 0x111   : > { %v468_v16 = vpop.permute.xlu1 %467  ;;  %v503_v36 = vsel %vm502_vm12, %v491_v17, %v493_v2 }
 0x112   : > { %892 = vmatpush1.bf16.msra.mxu0 %v503_v36 }
 0x114   : > { %v470_v38 = vpop.permute.xlu0 %469 }
 0x115   : > { %v499_v37 = vpop.permute.xlu1 %498  ;;  %v479_v39 = vsel %vm477_vm13, %v468_v16, %v470_v38 }
 0x116   : > { %806 = vmatprep.subr.bf16.mxu1 %v479_v39 }
 0x118   : > { %v501_v41 = vpop.permute.xlu0 %500 }
 0x119   : > { %v466_v40 = vpop.permute.xlu1 %465  ;;  %v506_v43 = vsel %vm502_vm12, %v499_v37, %v501_v41 }
 0x11a   : > { %v478_v42 = vsel %vm477_vm13, %v466_v40, %v468_v16  ;;  %893 = vmatprep.subr.bf16.mxu0 %v506_v43 }
 0x11b   : > { %807 = vmatpush1.bf16.msra.mxu1 %v478_v42 }
 0x11c   : > { %v497_v48 = vpop.permute.xlu0 %496 }
 0x11d   : > { %v474_v44 = vpop.permute.xlu1 %473  ;;  %v505_v49 = vsel %vm502_vm12, %v497_v48, %v499_v37 }
 0x11e   : > { %894 = vmatpush1.bf16.msra.mxu0 %v505_v49 }
 0x11f   : > { %1181 = vmatprep.subr.msk.bf16.mxu0 %vm1179_vm0, %v1180_v47 }
 0x120   : > { %v476_v29 = vpop.permute.xlu0 %475 }
 0x121   : > { %v472_v50 = vpop.permute.xlu1 %471  ;;  %v481_v52 = vsel %vm477_vm13, %v474_v44, %v476_v29 }
 0x122   : > { %v480_v51 = vsel %vm477_vm13, %v472_v50, %v474_v44  ;;  %808 = vmatprep.subr.bf16.mxu1 %v481_v52  ;;  %1184 = vmatpush1.bf16.msk.msra.mxu0 %vm1179_vm0, %v1180_v47 }
 0x123   : > { %809 = vmatpush1.bf16.msra.mxu1 %v480_v51 }
 0x125   : > { %924 = vmatmul.mubr.bf16.vlgmr.msra.gmra.mrb[0].mxu0 %v1275_v53 }
 0x126   : > { %811 = vmatmul.mubr.bf16.vlgmr.msra.gmra.mrb[0].mxu1 %v1272_v54  ;;  %933 = vmatprep.mubr.bf16.mxu0 %v1385_v11 }
 0x127   : > { %820 = vmatprep.mubr.bf16.mxu1 %v1276_v55 }
 0x12d   : > { %934 = vmatmul.mubr.bf16.gmra.mrb[4].mxu0 %v1278_v56 }
 0x12e   : > { %821 = vmatmul.mubr.bf16.gmra.mrb[4].mxu1 %v1279_v57  ;;  %943 = vmatprep.mubr.bf16.mxu0 %v1385_v11 }
 0x12f   : > { %830 = vmatprep.mubr.bf16.mxu1 %v1280_v58 }
 0x135   : > { %944 = vmatmul.mubr.bf16.gmra.mrb[8].mxu0 %v1282_v59 }
 0x136   : > { %831 = vmatmul.mubr.bf16.gmra.mrb[8].mxu1 %v1283_v60  ;;  %953 = vmatprep.mubr.bf16.mxu0 %v1385_v11 }
 0x137   : > { %840 = vmatprep.mubr.bf16.mxu1 %v1284_v61 }
 0x13d   : > { %954 = vmatmul.mubr.bf16.gmra.mrb[12].mxu0 %v1286_v62 }
 0x13e   : > { %841 = vmatmul.mubr.bf16.gmra.mrb[12].mxu1 %v1287_v63  ;;  %963 = vmatprep.mubr.bf16.mxu0 %v1385_v11 }
 0x13f   : > { %850 = vmatprep.mubr.bf16.mxu1 %v1288_v12 }
 0x145   : > { %964 = vmatmul.mubr.bf16.gmra.mrb[16].mxu0 %v1290_v13 }
 0x146   : > { %851 = vmatmul.mubr.bf16.gmra.mrb[16].mxu1 %v1291_v18  ;;  %973 = vmatprep.mubr.bf16.mxu0 %v1385_v11 }
 0x147   : > { %860 = vmatprep.mubr.bf16.mxu1 %v1292_v19 }
 0x14d   : > { %974 = vmatmul.mubr.bf16.gmra.mrb[20].mxu0 %v1294_v20 }
 0x14e   : > { %861 = vmatmul.mubr.bf16.gmra.mrb[20].mxu1 %v1295_v21  ;;  %983 = vmatprep.mubr.bf16.mxu0 %v1385_v11 }
 0x14f   : > { %870 = vmatprep.mubr.bf16.mxu1 %v1296_v22 }
 0x155   : > { %984 = vmatmul.mubr.bf16.gmra.mrb[24].mxu0 %v1298_v23 }
 0x156   : > { %871 = vmatmul.mubr.bf16.gmra.mrb[24].mxu1 %v1299_v24  ;;  %993 = vmatprep.mubr.bf16.mxu0 %v1385_v11 }
 0x157   : > { %880 = vmatprep.mubr.bf16.mxu1 %v1300_v25 }
 0x15d   : > { %994 = vmatmul.mubr.bf16.gmra.mrb[28].mxu0 %v1302_v26 }
 0x15e   : > { %881 = vmatmul.mubr.bf16.gmra.mrb[28].mxu1 %v1303_v27 }
 0x1f8   : > { %v925_v28 = vpop.f32.mrb[0].mxu0 }
 0x1f9   : > { %v812_v11 = vpop.f32.mrb[0].mxu1  ;;  %v927_v30 = vpop.f32.mrb[1].mxu0 }
 0x1fa   : > { %v926_v31 = vadd.f32 %v925_v28, %v812_v11  ;;  %v814_v32 = vpop.f32.mrb[1].mxu1  ;;  %v929_v33 = vpop.f32.mrb[2].mxu0 }
 0x1fb   : > { %v928_v34 = vadd.f32 %v927_v30, %v814_v32  ;;  %v816_v35 = vpop.f32.mrb[2].mxu1  ;;  %v931_v4 = vpop.f32.mrb[3].mxu0 }
 0x1fc   : > { %1004 = vst [vmem:[%s1584_s20] sm:$0xff] %v926_v31  ;;  %v930_v5 = vadd.f32 %v929_v33, %v816_v35  ;;  %v818_v6 = vpop.f32.mrb[3].mxu1 }
 0x1fd   : > { %1005 = vst [vmem:[%s1584_s20 + $0x8] sm:$0xff] %v928_v34  ;;  %v932_v8 = vadd.f32 %v931_v4, %v818_v6 }
 0x1fe   : > { %1006 = vst [vmem:[%s1584_s20 + $0x10] sm:$0xff] %v930_v5 }
 0x1ff   : > { %1007 = vst [vmem:[%s1584_s20 + $0x18] sm:$0xff] %v932_v8 }
 0x200   : > { %v935_v0 = vpop.f32.mrb[4].mxu0 }
 0x201   : > { %v822_v1 = vpop.f32.mrb[4].mxu1  ;;  %v937_v2 = vpop.f32.mrb[5].mxu0 }
 0x202   : > { %v936_v7 = vadd.f32 %v935_v0, %v822_v1  ;;  %v824_v3 = vpop.f32.mrb[5].mxu1  ;;  %v939_v9 = vpop.f32.mrb[6].mxu0 }
 0x203   : > { %v938_v10 = vadd.f32 %v937_v2, %v824_v3  ;;  %v826_v14 = vpop.f32.mrb[6].mxu1  ;;  %v941_v15 = vpop.f32.mrb[7].mxu0 }
 0x204   : > { %1008 = vst [vmem:[%s1584_s20 + $0x20] sm:$0xff] %v936_v7  ;;  %v940_v16 = vadd.f32 %v939_v9, %v826_v14  ;;  %v828_v17 = vpop.f32.mrb[7].mxu1 }
 0x205   : > { %1009 = vst [vmem:[%s1584_s20 + $0x28] sm:$0xff] %v938_v10  ;;  %v942_v36 = vadd.f32 %v941_v15, %v828_v17 }
 0x206   : > { %1010 = vst [vmem:[%s1584_s20 + $0x30] sm:$0xff] %v940_v16 }
 0x207   : > { %1011 = vst [vmem:[%s1584_s20 + $0x38] sm:$0xff] %v942_v36 }
 0x208   : > { %v945_v37 = vpop.f32.mrb[8].mxu0 }
 0x209   : > { %v832_v38 = vpop.f32.mrb[8].mxu1  ;;  %v947_v39 = vpop.f32.mrb[9].mxu0 }
 0x20a   : > { %v946_v40 = vadd.f32 %v945_v37, %v832_v38  ;;  %v834_v41 = vpop.f32.mrb[9].mxu1  ;;  %v949_v42 = vpop.f32.mrb[10].mxu0 }
 0x20b   : > { %v948_v43 = vadd.f32 %v947_v39, %v834_v41  ;;  %v836_v44 = vpop.f32.mrb[10].mxu1  ;;  %v951_v45 = vpop.f32.mrb[11].mxu0 }
 0x20c   : > { %1012 = vst [vmem:[%s1584_s20 + $0x40] sm:$0xff] %v946_v40  ;;  %v950_v46 = vadd.f32 %v949_v42, %v836_v44  ;;  %v838_v47 = vpop.f32.mrb[11].mxu1 }
 0x20d   : > { %1013 = vst [vmem:[%s1584_s20 + $0x48] sm:$0xff] %v948_v43  ;;  %v952_v48 = vadd.f32 %v951_v45, %v838_v47 }
 0x20e   : > { %1014 = vst [vmem:[%s1584_s20 + $0x50] sm:$0xff] %v950_v46 }
 0x20f   : > { %1015 = vst [vmem:[%s1584_s20 + $0x58] sm:$0xff] %v952_v48 }
 0x210   : > { %v955_v49 = vpop.f32.mrb[12].mxu0 }
 0x211   : > { %v842_v50 = vpop.f32.mrb[12].mxu1  ;;  %v957_v29 = vpop.f32.mrb[13].mxu0 }
 0x212   : > { %v956_v51 = vadd.f32 %v955_v49, %v842_v50  ;;  %v844_v52 = vpop.f32.mrb[13].mxu1  ;;  %v959_v53 = vpop.f32.mrb[14].mxu0 }
 0x213   : > { %v958_v54 = vadd.f32 %v957_v29, %v844_v52  ;;  %v846_v55 = vpop.f32.mrb[14].mxu1  ;;  %v961_v56 = vpop.f32.mrb[15].mxu0 }
 0x214   : > { %1016 = vst [vmem:[%s1584_s20 + $0x60] sm:$0xff] %v956_v51  ;;  %v960_v57 = vadd.f32 %v959_v53, %v846_v55  ;;  %v848_v58 = vpop.f32.mrb[15].mxu1 }
 0x215   : > { %1017 = vst [vmem:[%s1584_s20 + $0x68] sm:$0xff] %v958_v54  ;;  %v962_v59 = vadd.f32 %v961_v56, %v848_v58 }
 0x216   : > { %1018 = vst [vmem:[%s1584_s20 + $0x70] sm:$0xff] %v960_v57 }
 0x217   : > { %1019 = vst [vmem:[%s1584_s20 + $0x78] sm:$0xff] %v962_v59 }
 0x218   : > { %v965_v60 = vpop.f32.mrb[16].mxu0 }
 0x219   : > { %v852_v61 = vpop.f32.mrb[16].mxu1  ;;  %v967_v62 = vpop.f32.mrb[17].mxu0 }
 0x21a   : > { %v966_v63 = vadd.f32 %v965_v60, %v852_v61  ;;  %v854_v12 = vpop.f32.mrb[17].mxu1  ;;  %v969_v13 = vpop.f32.mrb[18].mxu0 }
 0x21b   : > { %v968_v18 = vadd.f32 %v967_v62, %v854_v12  ;;  %v856_v19 = vpop.f32.mrb[18].mxu1  ;;  %v971_v20 = vpop.f32.mrb[19].mxu0 }
 0x21c   : > { %1020 = vst [vmem:[%s1584_s20 + $0x80] sm:$0xff] %v966_v63  ;;  %v970_v21 = vadd.f32 %v969_v13, %v856_v19  ;;  %v858_v22 = vpop.f32.mrb[19].mxu1 }
 0x21d   : > { %1021 = vst [vmem:[%s1584_s20 + $0x88] sm:$0xff] %v968_v18  ;;  %v972_v23 = vadd.f32 %v971_v20, %v858_v22 }
 0x21e   : > { %1022 = vst [vmem:[%s1584_s20 + $0x90] sm:$0xff] %v970_v21 }
 0x21f   : > { %1023 = vst [vmem:[%s1584_s20 + $0x98] sm:$0xff] %v972_v23 }
 0x220   : > { %v975_v24 = vpop.f32.mrb[20].mxu0 }
 0x221   : > { %v862_v25 = vpop.f32.mrb[20].mxu1  ;;  %v977_v26 = vpop.f32.mrb[21].mxu0 }
 0x222   : > { %v976_v27 = vadd.f32 %v975_v24, %v862_v25  ;;  %v864_v28 = vpop.f32.mrb[21].mxu1  ;;  %v979_v11 = vpop.f32.mrb[22].mxu0 }
 0x223   : > { %v978_v30 = vadd.f32 %v977_v26, %v864_v28  ;;  %v866_v31 = vpop.f32.mrb[22].mxu1  ;;  %v981_v32 = vpop.f32.mrb[23].mxu0 }
 0x224   : > { %1024 = vst [vmem:[%s1584_s20 + $0xa0] sm:$0xff] %v976_v27  ;;  %v980_v33 = vadd.f32 %v979_v11, %v866_v31  ;;  %v868_v34 = vpop.f32.mrb[23].mxu1 }
 0x225   : > { %1025 = vst [vmem:[%s1584_s20 + $0xa8] sm:$0xff] %v978_v30  ;;  %v982_v35 = vadd.f32 %v981_v32, %v868_v34 }
 0x226   : > { %1026 = vst [vmem:[%s1584_s20 + $0xb0] sm:$0xff] %v980_v33 }
 0x227   : > { %1027 = vst [vmem:[%s1584_s20 + $0xb8] sm:$0xff] %v982_v35 }
 0x228   : > { %v985_v4 = vpop.f32.mrb[24].mxu0 }
 0x229   : > { %v872_v5 = vpop.f32.mrb[24].mxu1  ;;  %v987_v6 = vpop.f32.mrb[25].mxu0 }
 0x22a   : > { %v986_v8 = vadd.f32 %v985_v4, %v872_v5  ;;  %v874_v0 = vpop.f32.mrb[25].mxu1  ;;  %v989_v1 = vpop.f32.mrb[26].mxu0 }
 0x22b   : > { %v988_v2 = vadd.f32 %v987_v6, %v874_v0  ;;  %v876_v7 = vpop.f32.mrb[26].mxu1  ;;  %v991_v3 = vpop.f32.mrb[27].mxu0 }
 0x22c   : > { %1028 = vst [vmem:[%s1584_s20 + $0xc0] sm:$0xff] %v986_v8  ;;  %v990_v9 = vadd.f32 %v989_v1, %v876_v7  ;;  %v878_v10 = vpop.f32.mrb[27].mxu1 }
 0x22d   : > { %1029 = vst [vmem:[%s1584_s20 + $0xc8] sm:$0xff] %v988_v2  ;;  %v992_v14 = vadd.f32 %v991_v3, %v878_v10 }
 0x22e   : > { %1030 = vst [vmem:[%s1584_s20 + $0xd0] sm:$0xff] %v990_v9 }
 0x22f   : > { %1031 = vst [vmem:[%s1584_s20 + $0xd8] sm:$0xff] %v992_v14 }
 0x230   : > { %v995_v15 = vpop.f32.mrb[28].mxu0 }
 0x231   : > { %v882_v16 = vpop.f32.mrb[28].mxu1  ;;  %v997_v17 = vpop.f32.mrb[29].mxu0 }
 0x232   : > { %v996_v36 = vadd.f32 %v995_v15, %v882_v16  ;;  %v884_v37 = vpop.f32.mrb[29].mxu1  ;;  %v999_v38 = vpop.f32.mrb[30].mxu0 }
 0x233   : > { %v998_v39 = vadd.f32 %v997_v17, %v884_v37  ;;  %v886_v40 = vpop.f32.mrb[30].mxu1  ;;  %v1001_v41 = vpop.f32.mrb[31].mxu0 }
 0x234   : > { %1032 = vst [vmem:[%s1584_s20 + $0xe0] sm:$0xff] %v996_v36  ;;  %v1000_v42 = vadd.f32 %v999_v38, %v886_v40  ;;  %v888_v43 = vpop.f32.mrb[31].mxu1 }
 0x235   : > { %1033 = vst [vmem:[%s1584_s20 + $0xe8] sm:$0xff] %v998_v39  ;;  %v1002_v44 = vadd.f32 %v1001_v41, %v888_v43 }
 0x236   : > { %1034 = vst [vmem:[%s1584_s20 + $0xf0] sm:$0xff] %v1000_v42 }
 0x237   : > { %1035 = vst [vmem:[%s1584_s20 + $0xf8] sm:$0xff] %v1002_v44 }
 0x238 PF: > { %s12_s13 = sadd.s32 1, %s1374_s13   ;;  %s1636_s9 = smov %s1366_s11 }
 0x239   : > { %p9_p7 = scmp.ge.s32.totalorder %s12_s13, 14   ;;  %s1637_s10 = smov %s1370_s12 }
 0x23a   : > { %s1638_s11 = smov %s1641_s14  ;;  %s1639_s12 = smov %s1645_s15 }
 0x23b   :  { %11 = sbr.rel (!%p9_p7) target bundleno = 3 (0x3), region = 61 }

</bundles_post_ra>
